<compile_context>
chip_gen: v6e
topology: v6e:2x2x1
jax: 0.10.0
libtpu: 0.0.40
codegen_flags: <defaults>
</compile_context>

<pallas_src>
import jax
import jax.numpy as jnp
from jax.experimental import pallas as pl
from jax.experimental.pallas import tpu as pltpu

LANE = 128
TARGET_TILE_BYTES = 4 << 20     # ~4 MiB payload per grid step (per buffer)
MIN_STEPS = 8                   # >=4 pipelined steps per TC on v7x's 2 TensorCores
VMEM_LIMIT_BYTES = 32 << 20     # explicit scoped-VMEM limit, portable v5e/v6e/v7x
SMALL_FALLBACK_ELEMS = 1 << 17  # below ~128K elements plain JAX wins (launch overhead)


def _round_up(x: int, m: int) -> int:
    return -(-x // m) * m


def _sublane_for(dtype) -> int:
    # vreg sublane packing: 8 rows for 4-byte, 16 for 2-byte, 32 for 1-byte dtypes.
    itemsize = jnp.dtype(dtype).itemsize
    return max(8, 32 // itemsize)


def _lambda_kernel_factory(f):
    """Build a Pallas kernel body that applies `f` elementwise to its tile."""

    def kernel(x_ref, o_ref):
        o_ref[...] = f(x_ref[...]).astype(o_ref.dtype)

    return kernel


def make_lambda_pallas(f, *, flops_per_element=5, transcendentals_per_element=1):
    """Pallas analogue of ding's Lambda(nn.Module): returns g with g(x) == f(x)."""

    kernel = _lambda_kernel_factory(f)

    def apply(x):
        orig_shape = x.shape
        in_dtype = x.dtype
        n = x.size

        # Probe f once (trace-time only) for output dtype / shape preservation.
        probe = jax.eval_shape(f, jax.ShapeDtypeStruct(orig_shape, in_dtype))
        if tuple(probe.shape) != tuple(orig_shape):
            # TODO(synk): f is not shape-preserving / purely elementwise; no
            # tiled Pallas equivalent -> plain JAX keeps Lambda semantics.
            return f(x)
        out_dtype = probe.dtype

        # Tiny activations: pallas_call launch overhead dominates; XLA's fused
        # elementwise op is strictly faster.
        if n == 0 or n <= SMALL_FALLBACK_ELEMS:
            return f(x)

        in_size = jnp.dtype(in_dtype).itemsize
        out_size = jnp.dtype(out_dtype).itemsize
        itemsize = max(in_size, out_size)
        sublane = max(_sublane_for(in_dtype), _sublane_for(out_dtype))

        # Split off the sub-128 tail (computed in plain JAX) so the kernel only
        # ever touches a lane-dense (rows, 128) slab: exactly one HBM read and
        # one HBM write of the payload, no pad/slice round trips.
        n_main = (n // LANE) * LANE
        tail = n - n_main
        rows = n_main // LANE

        x_flat = jnp.ravel(x)
        x_main = x_flat if tail == 0 else x_flat[:n_main]
        x2d = x_main.reshape(rows, LANE)

        # Row tile: multiple of the dtype's sublane packing, up to ~4 MiB of
        # payload, chosen so the grid has >= MIN_STEPS (and preferably even)
        # steps.  The grid does NOT need to divide rows -- Pallas masks the
        # partial last block.
        row_tile_max = _round_up(
            max(sublane, TARGET_TILE_BYTES // (LANE * itemsize)), sublane
        )
        steps = max(MIN_STEPS, pl.cdiv(rows, row_tile_max))
        if steps % 2:
            steps += 1  # even step count: no 1-block imbalance across v7x's 2 TCs
        row_tile = max(
            sublane, min(row_tile_max, _round_up(pl.cdiv(rows, steps), sublane))
        )
        grid = (pl.cdiv(rows, row_tile),)

        cost = pl.CostEstimate(
            flops=flops_per_element * n_main,
            transcendentals=transcendentals_per_element * n_main,
            bytes_accessed=n_main * (in_size + out_size),
        )

        out2d = pl.pallas_call(
            kernel,
            out_shape=jax.ShapeDtypeStruct((rows, LANE), out_dtype),
            grid_spec=pltpu.PrefetchScalarGridSpec(
                num_scalar_prefetch=0,
                grid=grid,
                in_specs=[pl.BlockSpec((row_tile, LANE), lambda i: (i, 0))],
                out_specs=pl.BlockSpec((row_tile, LANE), lambda i: (i, 0)),
            ),
            compiler_params=pltpu.CompilerParams(
                dimension_semantics=("parallel",),
                vmem_limit_bytes=VMEM_LIMIT_BYTES,
            ),
            cost_estimate=cost,
        )(x2d)

        out_main = out2d.reshape(-1)
        if tail:
            out_tail = f(x_flat[n_main:]).astype(out_dtype)
            out_flat = jnp.concatenate([out_main, out_tail])
        else:
            out_flat = out_main
        return out_flat.reshape(orig_shape)

    return apply


if __name__ == "__main__":
    # Example lambda, as would be passed to Lambda(f) in ding: f(x) = x * sigmoid(x).
    f = lambda t: t * jax.nn.sigmoid(t)
    lambda_mod = make_lambda_pallas(f)

    key = jax.random.PRNGKey(0)
    k0, k1, k2 = jax.random.split(key, 3)

    # Primary small NCHW input (small-tensor fallback path).
    x = jax.random.normal(k0, (2, 4, 16, 16), dtype=jnp.float32)
    out = jax.block_until_ready(lambda_mod(x))
    ref = f(x)
    assert out.shape == x.shape and out.dtype == ref.dtype
    assert jnp.allclose(out, ref, atol=1e-6, rtol=1e-6)

    # Larger aligned input: exercises the Pallas kernel (multi-step grid,
    # exact read-once/write-once path, no padding).
    x_large = jax.random.normal(k1, (8, 64, 32, 32), dtype=jnp.float32)
    out_large = jax.block_until_ready(lambda_mod(x_large))
    ref_large = f(x_large)
    assert out_large.shape == x_large.shape and out_large.dtype == ref_large.dtype
    assert jnp.allclose(out_large, ref_large, atol=1e-6, rtol=1e-6)

    # Large, deliberately unaligned input: exercises the masked partial last
    # block (rows not a multiple of row_tile) and the <128-element JAX tail.
    x_unaligned = jax.random.normal(k2, (1031, 129), dtype=jnp.float32)
    out_un = jax.block_until_ready(lambda_mod(x_unaligned))
    ref_un = f(x_unaligned)
    assert out_un.shape == x_unaligned.shape and out_un.dtype == ref_un.dtype
    assert jnp.allclose(out_un, ref_un, atol=1e-6, rtol=1e-6)

    print("KERNEL_OK")
</pallas_src>

<mosaic_0001>
module attributes {stable_mosaic.version = 11 : i64} {
  func.func @kernel(%arg0: i32, %arg1: memref<512x128xf32, #tpu.memory_space<vmem>>, %arg2: memref<512x128xf32, #tpu.memory_space<vmem>>) attributes {dimension_semantics = [#tpu.dimension_semantics<parallel>], iteration_bounds = array<i64: 8>, scalar_prefetch = 0 : i64, scratch_operands = 0 : i64, tpu.core_type = #tpu.core_type<tc>, window_params = [{transform_indices = @transform_0, window_bounds = array<i64: 512, 128>}, {transform_indices = @transform_1, window_bounds = array<i64: 512, 128>}]} {
    %c0 = arith.constant 0 : index
    %c0_0 = arith.constant 0 : index
    %0 = vector.load %arg1[%c0, %c0_0] : memref<512x128xf32, #tpu.memory_space<vmem>>, vector<512x128xf32>
    %1 = arith.negf %0 : vector<512x128xf32>
    %2 = math.exp %1 : vector<512x128xf32>
    %cst = arith.constant 1.000000e+00 : f32
    %3 = vector.broadcast %cst : f32 to vector<512x128xf32>
    %4 = arith.addf %3, %2 : vector<512x128xf32>
    %5 = arith.divf %3, %4 : vector<512x128xf32>
    %6 = arith.mulf %0, %5 : vector<512x128xf32>
    %c0_1 = arith.constant 0 : index
    %c0_2 = arith.constant 0 : index
    %7 = vector.load %arg2[%c0_1, %c0_2] : memref<512x128xf32, #tpu.memory_space<vmem>>, vector<512x128xf32>
    tpu.vector_store %arg2[%c0_1, %c0_2], %6 {strides = array<i32>} : memref<512x128xf32, #tpu.memory_space<vmem>>, vector<512x128xf32>,
    return
  }
  func.func @transform_0(%arg0: i32) -> (i32, i32) {
    %c0_i32 = arith.constant 0 : i32
    %c0_i32_0 = arith.constant 0 : i32
    return %arg0, %c0_i32 : i32, i32
  }
  func.func @transform_1(%arg0: i32) -> (i32, i32) {
    %c0_i32 = arith.constant 0 : i32
    %c0_i32_0 = arith.constant 0 : i32
    return %arg0, %c0_i32 : i32, i32
  }
}

</mosaic_0001>

<bundles_post_ra>
// kernel: tpu_custom_call.1
= control target key start
LH: loop header
LB: loop body
LE: loop exit
PB: predicated region body
PF: predicated region fallthrough
CT: control target
= control target key end

     0   :  { %6 = vsyncpa [#allocation3], 0  ;;  %s1841_s0 = inlined_call_operand.hbm [shape: f32[4096,128], index: 0, kind: input, shape index: {}]   ;;  %s1842_s1 = inlined_call_operand.hbm [shape: f32[4096,128], index: 1, kind: output, shape index: {}]  }
   0x1   :  { %8 = vsyncpa [#allocation3 + $0x1], 0 }
   0x2   :  { %9 = vsyncpa [#allocation4], 0 }
   0x3   :  { %11 = vsyncpa [#allocation4 + $0x1], 0  ;;  %s1296_s6 = smov 0   ;;  %s1298_s7 = smov 0  }
   0x4   :  { %s1300_s8 = smov 0   ;;  %s1302_s9 = smov 0  }
   0x5 LB: > { %s1317_s10 = sadd.s32 4294967295, %s1278_s9   ;;  %s800_s11 = sadd.s32 4294967294, %s1278_s9   ;;  %s1278_s9 = sphi %s1302_s9, %s1856_s9   ;;  %s1274_s8 = sphi %s1300_s8, %s1855_s8   ;;  %s1270_s7 = sphi %s1298_s7, %s1854_s7   ;;  %s1266_s6 = sphi %s1296_s6, %s1853_s6  }
   0x6   : > { %s1321_s12 = sadd.s32 1, %s1278_s9   ;;  %s24_s13 = sadd.s32 1, %s1274_s8 }
   0x7   : > { %s21_s14 = ssub.s32 %s1278_s9, %s1321_s12  ;;  %p31_p0 = scmp.ne.s32.totalorder %s1274_s8, %s1270_s7 }
   0x8   : > { %p22_p1 = scmp.eq.s32.totalorder %s21_s14, 0  ;;  %p32_p2 = scmp.eq.s32.totalorder %s1278_s9, 0 }
   0x9   : > { %p37_p3 = scmp.ne.s32.totalorder %s1270_s7, %s1266_s6  ;;  %p38_p4 = scmp.eq.s32.totalorder %s1317_s10, 0 }
   0xa   : > { %s1333_s15 = scalar_select %p22_p1, %s1274_s8, %s24_s13  }
   0xb   : > { %p1335_p5 = por %p32_p2, %p31_p0  ;;  %p1339_p6 = por %p38_p4, %p37_p3 }
   0xc   : > { %p61_p7 = scmp.eq.s32.totalorder %s1317_s10, 7  ;;  %p67_p8 = scmp.eq.s32.totalorder %s800_s11, 7 }
   0xd   : > { %s1846_s17 = scalar_select %p1339_p6, 1, 0 }
   0xe   : > { %p892_p9 = scmp.lt.s32.totalorder %s1278_s9, 8  ;;  %p1345_p10 = por %p61_p7, %p31_p0 }
   0xf   : > { %p1349_p11 = por %p67_p8, %p37_p3  ;;  %s87_s20 = sand.u32 1, %s1274_s8  }
  0x10   : > { %s1847_s18 = scalar_select %p1345_p10, 1, 0 }
  0x11   : > { %s1848_s19 = scalar_select %p1349_p11, 1, 0 }
  0x12   : > { %s878_s21 = sshll.u32 %s1278_s9, 13  ;;  %s803_s22 = sshll.u32 %s87_s20, 9 }
  0x13   : > { %s1358_s25 = scalar_lea.hbm %s1841_s0, %s878_s21  ;;  %s91_s26 = scalar_lea.vmem [#allocation2], %s803_s22 }
  0x14   : > { %s98_s27 = sshll.u32 %s91_s26, 4  ;;  %p1362_p12 = pnand %p892_p9, %p1335_p5  ;;  %s1366_s27 = int_to_ptr.vmem [resolvable:$true] %s98_s27 }
  0x15   : > { %s1368_s29 = scalar_lea.sflag [#allocation3], %s87_s20  ;;  %s1186_s30 = scalar_lea.hbm %s1358_s25, 8192 }
  0x16   : > { %p1187_p13 = scmp.ne.s32.totalorder %s1358_s25, %s1186_s30  ;;  %p1188_p0 = pneg %p1362_p12 }
  0x17   : > { %s1191_s4 = scalar_lea.hbm %s1841_s0, 65536  ;;  %p1192_p3 = scmp.lt.s32.totalorder %s1358_s25, %s1841_s0 }
  0x18   : > { %p1189_p1 = pnand %p1188_p0, %p1187_p13  ;;  %p1193_p4 = scmp.lt.s32.totalorder %s1191_s4, %s1186_s30 }
  0x1a   : > { %p1190_p2 = pneg %p1189_p1  ;;  %p1194_p5 = por %p1193_p4, %p1192_p3 }
  0x1c   : > { %p1195_p7 = pnand %p1194_p5, %p1190_p2 }
  0x1e   : > { %1198 = shalt.err (!%p1195_p7)
}
  0x1f   : > { %s1199_s13 = scalar_lea.vmem %s1366_s27, 8192  ;;  %s1280_s14 = smov [#allocation2]  }
  0x20   : > { %p1200_p8 = scmp.ne.s32.totalorder %s1366_s27, %s1199_s13  ;;  %s1204_s16 = sshll.u32 %s1280_s14, 4  ;;  %s1205_s16 = int_to_ptr.vmem [resolvable:$false] %s1204_s16 }
  0x21   : > { %s1206_s20 = scalar_lea.vmem %s1205_s16, 16384  ;;  %p1207_p1 = scmp.lt.s32.totalorder %s1366_s27, %s1205_s16 }
  0x22   : > { %p1202_p9 = pnand %p1200_p8, %p1188_p0  ;;  %p1208_p11 = scmp.lt.s32.totalorder %s1206_s20, %s1199_s13 }
  0x24   : > { %p1203_p13 = pneg %p1202_p9  ;;  %p1209_p10 = por %p1208_p11, %p1207_p1 }
  0x26   : > { %p1210_p6 = pnand %p1209_p10, %p1203_p13 }
  0x28   : > { %1213 = shalt.err (!%p1210_p6)
}
  0x29   : > { %s1281_s21 = smov 128   ;;  %s1282_s22 = smov 8  }
  0x2a   : > { %887 = dma.hbm_to_vmem [thread:$0]  (!%p1362_p12), %s1358_s25, 8192, %s1366_s27, %s1368_s29, %s1281_s21, %s1281_s21, %s1282_s22  }
  0x2b   : > { %p806_p0 = scmp.ge.s32.totalorder %s1278_s9, 1  ;;  %p106_p2 = scmp.lt.s32.totalorder %s1278_s9, 9 }
  0x2d   : > { %p107_p3 = pnand %p806_p0, %p106_p2 }
  0x2e   : > { %s1392_s23 = sand.u32 (!%p107_p3), 1, %s1270_s7   ;;  %p1850_p6 = scmp.ne.s32.totalorder (!%p107_p3), %s1846_s17, 0 }
  0x2f   : > { %110 = sbr.rel (%p107_p3) target bundleno = 213 (0xd5), region = 24  ;;  %s807_s24 = sshll.u32 (!%p107_p3), %s1392_s23, 9 }
  0x30   : > { %s113_s26 = scalar_lea.sflag (!%p107_p3), [#allocation3], %s1392_s23  ;;  %s1398_s30 = scalar_lea.vmem (!%p107_p3), [#allocation2], %s807_s24 }
  0x34   : > { %1257 = dma.done.wait (%p1850_p6), %s113_s26, 8192  }
  0x35   : > { %1259 = vsyncadd (%p1850_p6), %s113_s26, 4294959104  ;;  %v1405_v0 = vld [vmem:[%s1398_s30] sm:$0xff]  ;;  %v1408_v1 = vld [vmem:[%s1398_s30 + $0x8] sm:$0xff]  ;;  %s1497_s17 = scalar_lea.vmem [#allocation5], %s807_s24  ;;  %s879_s25 = sshll.u32 %s1317_s10, 13 }
  0x36   : > { %v1411_v2 = vld [vmem:[%s1398_s30 + $0x10] sm:$0xff]  ;;  %v809_v3 = vmul.f32 -1.442695, %v1405_v0  ;;  %v810_v4 = vmul.f32 -1.442695, %v1408_v1  ;;  %v1417_v6 = vld [vmem:[%s1398_s30 + $0x18] sm:$0xff]  ;;  %s1793_s10 = scalar_lea.hbm %s1842_s1, %s879_s25 }
  0x37   : > { %v811_v5 = vmul.f32 -1.442695, %v1411_v2  ;;  %v1420_v7 = vld [vmem:[%s1398_s30 + $0x20] sm:$0xff]  ;;  %v1423_v8 = vld [vmem:[%s1398_s30 + $0x28] sm:$0xff]  ;;  %v812_v9 = vmul.f32 -1.442695, %v1417_v6 }
  0x38   : > { %930 = vpow2.f32 %v809_v3  ;;  %v813_v10 = vmul.f32 -1.442695, %v1420_v7  ;;  %v814_v11 = vmul.f32 -1.442695, %v1423_v8  ;;  %v1429_v12 = vld [vmem:[%s1398_s30 + $0x30] sm:$0xff]  ;;  %v1432_v13 = vld [vmem:[%s1398_s30 + $0x38] sm:$0xff] }
  0x39   : > { %932 = vpow2.f32 %v810_v4  ;;  %v1435_v14 = vld [vmem:[%s1398_s30 + $0x40] sm:$0xff]  ;;  %v815_v15 = vmul.f32 -1.442695, %v1429_v12  ;;  %v816_v16 = vmul.f32 -1.442695, %v1432_v13  ;;  %v1440_v17 = vld [vmem:[%s1398_s30 + $0x48] sm:$0xff] }
  0x3a   : > { %934 = vpow2.f32 %v811_v5  ;;  %v1443_v18 = vld [vmem:[%s1398_s30 + $0x50] sm:$0xff]  ;;  %v817_v19 = vmul.f32 -1.442695, %v1435_v14  ;;  %v1447_v20 = vld [vmem:[%s1398_s30 + $0x58] sm:$0xff]  ;;  %v818_v21 = vmul.f32 -1.442695, %v1440_v17 }
  0x3b   : > { %936 = vpow2.f32 %v812_v9  ;;  %v1451_v22 = vld [vmem:[%s1398_s30 + $0x60] sm:$0xff]  ;;  %v819_v23 = vmul.f32 -1.442695, %v1443_v18  ;;  %v1455_v24 = vld [vmem:[%s1398_s30 + $0x68] sm:$0xff]  ;;  %v820_v25 = vmul.f32 -1.442695, %v1447_v20 }
  0x3c   : > { %938 = vpow2.f32 %v813_v10  ;;  %v1459_v26 = vld [vmem:[%s1398_s30 + $0x70] sm:$0xff]  ;;  %v821_v27 = vmul.f32 -1.442695, %v1451_v22  ;;  %v1463_v28 = vld [vmem:[%s1398_s30 + $0x78] sm:$0xff]  ;;  %v822_v29 = vmul.f32 -1.442695, %v1455_v24 }
  0x3d   : > { %940 = vpow2.f32 %v814_v11  ;;  %v823_v30 = vmul.f32 -1.442695, %v1459_v26  ;;  %v824_v31 = vmul.f32 -1.442695, %v1463_v28  ;;  %v1469_v57 = vld [vmem:[%s1398_s30 + $0x80] sm:$0xff]  ;;  %v1472_v60 = vld [vmem:[%s1398_s30 + $0x88] sm:$0xff] }
  0x3e   : > { %942 = vpow2.f32 %v815_v15  ;;  %v1475_v63 = vld [vmem:[%s1398_s30 + $0x90] sm:$0xff]  ;;  %v825_v5 = vmul.f32 -1.442695, %v1469_v57  ;;  %v1479_v9 = vld [vmem:[%s1398_s30 + $0x98] sm:$0xff]  ;;  %v826_v15 = vmul.f32 -1.442695, %v1472_v60 }
  0x3f   : > { %944 = vpow2.f32 %v816_v16  ;;  %v1483_v16 = vld [vmem:[%s1398_s30 + $0xa0] sm:$0xff]  ;;  %s727_s27 = sshll.u32 %s1497_s17, 4  ;;  %s714_s2 = scalar_lea.sflag [#allocation4], %s1392_s23  ;;  %s1795_s27 = int_to_ptr.vmem [resolvable:$true] %s727_s27 }
  0x40   : > { %946 = vpow2.f32 %v817_v19  ;;  %s1214_s3 = scalar_lea.vmem %s1795_s27, 8192  ;;  %p1851_p11 = scmp.ne.s32.totalorder %s1847_s18, 0 }
  0x41   : > { %948 = vpow2.f32 %v818_v21  ;;  %p1215_p10 = scmp.ne.s32.totalorder %s1795_s27, %s1214_s3  ;;  %s1283_s4 = smov [#allocation5]  }
  0x42   : > { %950 = vpow2.f32 %v819_v23  ;;  %v827_v23 = vmul.f32 -1.442695, %v1475_v63  ;;  %s1218_s5 = sshll.u32 %s1283_s4, 4  ;;  %s1219_s5 = int_to_ptr.vmem [resolvable:$false] %s1218_s5 }
  0x43   : > { %952 = vpow2.f32 %v820_v25  ;;  %v1488_v25 = vld [vmem:[%s1398_s30 + $0xa8] sm:$0xff]  ;;  %p1216_p12 = pnand %p1215_p10, %p1851_p11  ;;  %s1220_s11 = scalar_lea.vmem %s1219_s5, 16384 }
  0x44   : > { %954 = vpow2.f32 %v821_v27  ;;  %p1221_p5 = scmp.lt.s32.totalorder %s1795_s27, %s1219_s5  ;;  %p1222_p7 = scmp.lt.s32.totalorder %s1220_s11, %s1214_s3 }
  0x45   : > { %v931_v32 = vpop.eup %930  ;;  %956 = vpow2.f32 %v822_v29  ;;  %p1217_p4 = pneg %p1216_p12 }
  0x46   : > { %v933_v33 = vpop.eup %932  ;;  %v393_v34 = vadd.f32 1.0, %v931_v32  ;;  %958 = vpow2.f32 %v823_v30  ;;  %v828_v30 = vmul.f32 -1.442695, %v1479_v9  ;;  %p1223_p8 = por %p1222_p7, %p1221_p5 }
  0x47   : > { %v935_v35 = vpop.eup %934  ;;  %v394_v36 = vadd.f32 1.0, %v933_v33  ;;  %960 = vpow2.f32 %v824_v31  ;;  %v1493_v31 = vld [vmem:[%s1398_s30 + $0xb0] sm:$0xff]  ;;  %v1503_v33 = vld [vmem:[%s1398_s30 + $0xb8] sm:$0xff] }
  0x48   : > { %v937_v37 = vpop.eup %936  ;;  %962 = vrcp.f32 %v393_v34  ;;  %v395_v38 = vadd.f32 1.0, %v935_v35  ;;  %p1224_p9 = pnand %p1223_p8, %p1217_p4 }
  0x49   : > { %v939_v39 = vpop.eup %938  ;;  %964 = vrcp.f32 %v394_v36  ;;  %v396_v40 = vadd.f32 1.0, %v937_v37  ;;  %v830_v36 = vmul.f32 -1.442695, %v1488_v25  ;;  %v1509_v37 = vld [vmem:[%s1398_s30 + $0xc0] sm:$0xff] }
  0x4a   : > { %v941_v41 = vpop.eup %940  ;;  %966 = vrcp.f32 %v395_v38  ;;  %v397_v42 = vadd.f32 1.0, %v939_v39  ;;  %v831_v39 = vmul.f32 -1.442695, %v1493_v31 }
  0x4b   : > { %v943_v43 = vpop.eup %942  ;;  %968 = vrcp.f32 %v396_v40  ;;  %v398_v44 = vadd.f32 1.0, %v941_v41  ;;  %v1515_v40 = vld [vmem:[%s1398_s30 + $0xc8] sm:$0xff] }
  0x4c   : > { %v945_v45 = vpop.eup %944  ;;  %970 = vrcp.f32 %v397_v42  ;;  %v399_v46 = vadd.f32 1.0, %v943_v43  ;;  %v832_v42 = vmul.f32 -1.442695, %v1503_v33  ;;  %v1521_v43 = vld [vmem:[%s1398_s30 + $0xd0] sm:$0xff] }
  0x4d   : > { %v947_v47 = vpop.eup %946  ;;  %972 = vrcp.f32 %v398_v44  ;;  %v400_v48 = vadd.f32 1.0, %v945_v45  ;;  %v833_v45 = vmul.f32 -1.442695, %v1509_v37 }
  0x4e   : > { %v949_v49 = vpop.eup %948  ;;  %974 = vrcp.f32 %v399_v46  ;;  %v401_v50 = vadd.f32 1.0, %v947_v47  ;;  %v1527_v46 = vld [vmem:[%s1398_s30 + $0xd8] sm:$0xff] }
  0x4f   : > { %v951_v51 = vpop.eup %950  ;;  %976 = vrcp.f32 %v400_v48  ;;  %v402_v52 = vadd.f32 1.0, %v949_v49  ;;  %v834_v48 = vmul.f32 -1.442695, %v1515_v40  ;;  %v1533_v49 = vld [vmem:[%s1398_s30 + $0xe0] sm:$0xff] }
  0x50   : > { %v953_v53 = vpop.eup %952  ;;  %978 = vrcp.f32 %v401_v50  ;;  %v403_v54 = vadd.f32 1.0, %v951_v51  ;;  %v835_v51 = vmul.f32 -1.442695, %v1521_v43 }
  0x51   : > { %v955_v55 = vpop.eup %954  ;;  %980 = vrcp.f32 %v402_v52  ;;  %v404_v56 = vadd.f32 1.0, %v953_v53  ;;  %v1539_v52 = vld [vmem:[%s1398_s30 + $0xe8] sm:$0xff] }
  0x52   : > { %v957_v58 = vpop.eup %956  ;;  %982 = vrcp.f32 %v403_v54  ;;  %v405_v59 = vadd.f32 1.0, %v955_v55  ;;  %v836_v54 = vmul.f32 -1.442695, %v1527_v46  ;;  %v1545_v55 = vld [vmem:[%s1398_s30 + $0xf0] sm:$0xff] }
  0x53   : > { %v959_v61 = vpop.eup %958  ;;  %984 = vrcp.f32 %v404_v56  ;;  %v406_v62 = vadd.f32 1.0, %v957_v58  ;;  %v837_v58 = vmul.f32 -1.442695, %v1533_v49 }
  0x54   : > { %v961_v3 = vpop.eup %960  ;;  %986 = vrcp.f32 %v405_v59  ;;  %v407_v4 = vadd.f32 1.0, %v959_v61  ;;  %v1551_v59 = vld [vmem:[%s1398_s30 + $0xf8] sm:$0xff] }
  0x55   : > { %v963_v10 = vpop.eup %962  ;;  %988 = vrcp.f32 %v406_v62  ;;  %v408_v11 = vadd.f32 1.0, %v961_v3  ;;  %v838_v62 = vmul.f32 -1.442695, %v1539_v52 }
  0x56   : > { %v965_v19 = vpop.eup %964  ;;  %v585_v21 = vmul.f32 %v963_v10, %v1405_v0  ;;  %990 = vrcp.f32 %v407_v4 }
  0x57   : > { %v967_v27 = vpop.eup %966  ;;  %v586_v29 = vmul.f32 %v965_v19, %v1408_v1  ;;  %992 = vrcp.f32 %v408_v11  ;;  %v829_v1 = vmul.f32 -1.442695, %v1483_v16 }
  0x58   : > { %v969_v32 = vpop.eup %968  ;;  %649 = vst [vmem:[%s1497_s17] sm:$0xff] %v585_v21  ;;  %v587_v0 = vmul.f32 %v967_v27, %v1411_v2  ;;  %994 = vpow2.f32 %v825_v5 }
  0x59   : > { %v971_v34 = vpop.eup %970  ;;  %650 = vst [vmem:[%s1497_s17 + $0x8] sm:$0xff] %v586_v29  ;;  %v588_v35 = vmul.f32 %v969_v32, %v1417_v6  ;;  %996 = vpow2.f32 %v826_v15 }
  0x5a   : > { %v973_v38 = vpop.eup %972  ;;  %651 = vst [vmem:[%s1497_s17 + $0x10] sm:$0xff] %v587_v0  ;;  %v589_v2 = vmul.f32 %v971_v34, %v1420_v7  ;;  %998 = vpow2.f32 %v827_v23 }
  0x5b   : > { %v975_v41 = vpop.eup %974  ;;  %652 = vst [vmem:[%s1497_s17 + $0x18] sm:$0xff] %v588_v35  ;;  %v590_v6 = vmul.f32 %v973_v38, %v1423_v8  ;;  %1000 = vpow2.f32 %v828_v30 }
  0x5c   : > { %v977_v44 = vpop.eup %976  ;;  %653 = vst [vmem:[%s1497_s17 + $0x20] sm:$0xff] %v589_v2  ;;  %v591_v7 = vmul.f32 %v975_v41, %v1429_v12  ;;  %1002 = vpow2.f32 %v829_v1 }
  0x5d   : > { %v979_v47 = vpop.eup %978  ;;  %654 = vst [vmem:[%s1497_s17 + $0x28] sm:$0xff] %v590_v6  ;;  %v592_v8 = vmul.f32 %v977_v44, %v1432_v13  ;;  %1004 = vpow2.f32 %v830_v36 }
  0x5e   : > { %v981_v50 = vpop.eup %980  ;;  %655 = vst [vmem:[%s1497_s17 + $0x30] sm:$0xff] %v591_v7  ;;  %v593_v12 = vmul.f32 %v979_v47, %v1435_v14  ;;  %1006 = vpow2.f32 %v831_v39 }
  0x5f   : > { %v983_v53 = vpop.eup %982  ;;  %656 = vst [vmem:[%s1497_s17 + $0x38] sm:$0xff] %v592_v8  ;;  %v594_v13 = vmul.f32 %v981_v50, %v1440_v17  ;;  %1008 = vpow2.f32 %v832_v42  ;;  %v1569_v8 = vld [vmem:[%s1398_s30 + $0x100] sm:$0xff] }
  0x60   : > { %v985_v56 = vpop.eup %984  ;;  %657 = vst [vmem:[%s1497_s17 + $0x40] sm:$0xff] %v593_v12  ;;  %v595_v14 = vmul.f32 %v983_v53, %v1443_v18  ;;  %1010 = vpow2.f32 %v833_v45  ;;  %v839_v18 = vmul.f32 -1.442695, %v1545_v55  ;;  %v1572_v12 = vld [vmem:[%s1398_s30 + $0x108] sm:$0xff] }
  0x61   : > { %v987_v61 = vpop.eup %986  ;;  %658 = vst [vmem:[%s1497_s17 + $0x48] sm:$0xff] %v594_v13  ;;  %v596_v17 = vmul.f32 %v985_v56, %v1447_v20  ;;  %1012 = vpow2.f32 %v834_v48  ;;  %v840_v20 = vmul.f32 -1.442695, %v1551_v59  ;;  %v1575_v13 = vld [vmem:[%s1398_s30 + $0x110] sm:$0xff] }
  0x62   : > { %v989_v3 = vpop.eup %988  ;;  %659 = vst [vmem:[%s1497_s17 + $0x50] sm:$0xff] %v595_v14  ;;  %v597_v4 = vmul.f32 %v987_v61, %v1451_v22  ;;  %1014 = vpow2.f32 %v835_v51  ;;  %v841_v14 = vmul.f32 -1.442695, %v1569_v8 }
  0x63   : > { %v991_v5 = vpop.eup %990  ;;  %660 = vst [vmem:[%s1497_s17 + $0x58] sm:$0xff] %v596_v17  ;;  %v598_v10 = vmul.f32 %v989_v3, %v1455_v24  ;;  %1016 = vpow2.f32 %v836_v54  ;;  %v1583_v3 = vld [vmem:[%s1398_s30 + $0x120] sm:$0xff] }
  0x64   : > { %v993_v11 = vpop.eup %992  ;;  %661 = vst [vmem:[%s1497_s17 + $0x60] sm:$0xff] %v597_v4  ;;  %v599_v15 = vmul.f32 %v991_v5, %v1459_v26  ;;  %1018 = vpow2.f32 %v837_v58  ;;  %v1579_v58 = vld [vmem:[%s1398_s30 + $0x118] sm:$0xff]  ;;  %v843_v5 = vmul.f32 -1.442695, %v1575_v13 }
  0x65   : > { %v995_v19 = vpop.eup %994  ;;  %662 = vst [vmem:[%s1497_s17 + $0x68] sm:$0xff] %v598_v10  ;;  %v600_v22 = vmul.f32 %v993_v11, %v1463_v28  ;;  %1020 = vpow2.f32 %v838_v62  ;;  %v842_v62 = vmul.f32 -1.442695, %v1572_v12  ;;  %v1588_v10 = vld [vmem:[%s1398_s30 + $0x128] sm:$0xff] }
  0x66   : > { %v997_v21 = vpop.eup %996  ;;  %663 = vst [vmem:[%s1497_s17 + $0x70] sm:$0xff] %v599_v15  ;;  %v409_v23 = vadd.f32 1.0, %v995_v19  ;;  %1022 = vpow2.f32 %v839_v18  ;;  %v844_v15 = vmul.f32 -1.442695, %v1579_v58  ;;  %v1593_v19 = vld [vmem:[%s1398_s30 + $0x130] sm:$0xff] }
  0x67   : > { %v999_v27 = vpop.eup %998  ;;  %664 = vst [vmem:[%s1497_s17 + $0x78] sm:$0xff] %v600_v22  ;;  %v410_v24 = vadd.f32 1.0, %v997_v21  ;;  %1024 = vpow2.f32 %v840_v20  ;;  %v845_v21 = vmul.f32 -1.442695, %v1583_v3 }
  0x68   : > { %v1001_v29 = vpop.eup %1000  ;;  %1026 = vrcp.f32 %v409_v23  ;;  %v411_v30 = vadd.f32 1.0, %v999_v27  ;;  %v1599_v23 = vld [vmem:[%s1398_s30 + $0x138] sm:$0xff] }
  0x69   : > { %v1003_v32 = vpop.eup %1002  ;;  %1028 = vrcp.f32 %v410_v24  ;;  %v412_v26 = vadd.f32 1.0, %v1001_v29  ;;  %v846_v24 = vmul.f32 -1.442695, %v1588_v10  ;;  %v1605_v29 = vld [vmem:[%s1398_s30 + $0x140] sm:$0xff] }
  0x6a   : > { %v1005_v0 = vpop.eup %1004  ;;  %1030 = vrcp.f32 %v411_v30  ;;  %v413_v1 = vadd.f32 1.0, %v1003_v32  ;;  %v847_v32 = vmul.f32 -1.442695, %v1593_v19 }
  0x6b   : > { %v1007_v34 = vpop.eup %1006  ;;  %1032 = vrcp.f32 %v412_v26  ;;  %v414_v28 = vadd.f32 1.0, %v1005_v0  ;;  %v1611_v26 = vld [vmem:[%s1398_s30 + $0x148] sm:$0xff] }
  0x6c   : > { %v1009_v35 = vpop.eup %1008  ;;  %1034 = vrcp.f32 %v413_v1  ;;  %v415_v36 = vadd.f32 1.0, %v1007_v34  ;;  %v848_v1 = vmul.f32 -1.442695, %v1599_v23  ;;  %v1617_v34 = vld [vmem:[%s1398_s30 + $0x150] sm:$0xff] }
  0x6d   : > { %v1011_v38 = vpop.eup %1010  ;;  %1036 = vrcp.f32 %v414_v28  ;;  %v416_v2 = vadd.f32 1.0, %v1009_v35  ;;  %v849_v35 = vmul.f32 -1.442695, %v1605_v29 }
  0x6e   : > { %v1013_v39 = vpop.eup %1012  ;;  %1038 = vrcp.f32 %v415_v36  ;;  %v417_v41 = vadd.f32 1.0, %v1011_v38  ;;  %v1623_v36 = vld [vmem:[%s1398_s30 + $0x158] sm:$0xff] }
  0x6f   : > { %v1015_v6 = vpop.eup %1014  ;;  %1040 = vrcp.f32 %v416_v2  ;;  %v418_v42 = vadd.f32 1.0, %v1013_v39  ;;  %v850_v2 = vmul.f32 -1.442695, %v1611_v26  ;;  %v1629_v39 = vld [vmem:[%s1398_s30 + $0x160] sm:$0xff] }
  0x70   : > { %v1017_v44 = vpop.eup %1016  ;;  %1042 = vrcp.f32 %v417_v41  ;;  %v419_v7 = vadd.f32 1.0, %v1015_v6  ;;  %v851_v6 = vmul.f32 -1.442695, %v1617_v34 }
  0x71   : > { %v1019_v45 = vpop.eup %1018  ;;  %1044 = vrcp.f32 %v418_v42  ;;  %v420_v47 = vadd.f32 1.0, %v1017_v44  ;;  %v1635_v42 = vld [vmem:[%s1398_s30 + $0x168] sm:$0xff] }
  0x72   : > { %v1021_v48 = vpop.eup %1020  ;;  %1046 = vrcp.f32 %v419_v7  ;;  %v421_v50 = vadd.f32 1.0, %v1019_v45  ;;  %v852_v7 = vmul.f32 -1.442695, %v1623_v36  ;;  %v1641_v45 = vld [vmem:[%s1398_s30 + $0x170] sm:$0xff] }
  0x73   : > { %v1023_v51 = vpop.eup %1022  ;;  %1048 = vrcp.f32 %v420_v47  ;;  %v422_v53 = vadd.f32 1.0, %v1021_v48  ;;  %v853_v48 = vmul.f32 -1.442695, %v1629_v39 }
  0x74   : > { %v1025_v54 = vpop.eup %1024  ;;  %1050 = vrcp.f32 %v421_v50  ;;  %v423_v56 = vadd.f32 1.0, %v1023_v51  ;;  %v1647_v50 = vld [vmem:[%s1398_s30 + $0x178] sm:$0xff] }
  0x75   : > { %v1027_v61 = vpop.eup %1026  ;;  %1052 = vrcp.f32 %v422_v53  ;;  %v424_v17 = vadd.f32 1.0, %v1025_v54  ;;  %v854_v53 = vmul.f32 -1.442695, %v1635_v42 }
  0x76   : > { %v1029_v4 = vpop.eup %1028  ;;  %v601_v18 = vmul.f32 %v1027_v61, %v1469_v57  ;;  %1054 = vrcp.f32 %v423_v56 }
  0x77   : > { %v1031_v20 = vpop.eup %1030  ;;  %v602_v11 = vmul.f32 %v1029_v4, %v1472_v60  ;;  %1056 = vrcp.f32 %v424_v17 }
  0x78   : > { %v1033_v22 = vpop.eup %1032  ;;  %665 = vst [vmem:[%s1497_s17 + $0x80] sm:$0xff] %v601_v18  ;;  %v603_v57 = vmul.f32 %v1031_v20, %v1475_v63  ;;  %1058 = vpow2.f32 %v841_v14 }
  0x79   : > { %v1035_v27 = vpop.eup %1034  ;;  %666 = vst [vmem:[%s1497_s17 + $0x88] sm:$0xff] %v602_v11  ;;  %v604_v60 = vmul.f32 %v1033_v22, %v1479_v9  ;;  %1060 = vpow2.f32 %v842_v62 }
  0x7a   : > { %v1037_v30 = vpop.eup %1036  ;;  %667 = vst [vmem:[%s1497_s17 + $0x90] sm:$0xff] %v603_v57  ;;  %v605_v63 = vmul.f32 %v1035_v27, %v1483_v16  ;;  %1062 = vpow2.f32 %v843_v5 }
  0x7b   : > { %v1039_v0 = vpop.eup %1038  ;;  %668 = vst [vmem:[%s1497_s17 + $0x98] sm:$0xff] %v604_v60  ;;  %v606_v9 = vmul.f32 %v1037_v30, %v1488_v25  ;;  %1064 = vpow2.f32 %v844_v15 }
  0x7c   : > { %v1041_v28 = vpop.eup %1040  ;;  %669 = vst [vmem:[%s1497_s17 + $0xa0] sm:$0xff] %v605_v63  ;;  %v607_v16 = vmul.f32 %v1039_v0, %v1493_v31  ;;  %1066 = vpow2.f32 %v845_v21 }
  0x7d   : > { %v1043_v38 = vpop.eup %1042  ;;  %670 = vst [vmem:[%s1497_s17 + $0xa8] sm:$0xff] %v606_v9  ;;  %v608_v25 = vmul.f32 %v1041_v28, %v1503_v33  ;;  %1068 = vpow2.f32 %v846_v24 }
  0x7e   : > { %v1045_v41 = vpop.eup %1044  ;;  %671 = vst [vmem:[%s1497_s17 + $0xb0] sm:$0xff] %v607_v16  ;;  %v609_v31 = vmul.f32 %v1043_v38, %v1509_v37  ;;  %1070 = vpow2.f32 %v847_v32 }
  0x7f   : > { %v1047_v44 = vpop.eup %1046  ;;  %672 = vst [vmem:[%s1497_s17 + $0xb8] sm:$0xff] %v608_v25  ;;  %v610_v33 = vmul.f32 %v1045_v41, %v1515_v40  ;;  %1072 = vpow2.f32 %v848_v1  ;;  %v1665_v25 = vld [vmem:[%s1398_s30 + $0x180] sm:$0xff] }
  0x80   : > { %v1049_v47 = vpop.eup %1048  ;;  %673 = vst [vmem:[%s1497_s17 + $0xc0] sm:$0xff] %v609_v31  ;;  %v611_v37 = vmul.f32 %v1047_v44, %v1521_v43  ;;  %1074 = vpow2.f32 %v849_v35  ;;  %v855_v43 = vmul.f32 -1.442695, %v1641_v45  ;;  %v1668_v31 = vld [vmem:[%s1398_s30 + $0x188] sm:$0xff] }
  0x81   : > { %v1051_v51 = vpop.eup %1050  ;;  %674 = vst [vmem:[%s1497_s17 + $0xc8] sm:$0xff] %v610_v33  ;;  %v612_v40 = vmul.f32 %v1049_v47, %v1527_v46  ;;  %1076 = vpow2.f32 %v850_v2  ;;  %v856_v46 = vmul.f32 -1.442695, %v1647_v50  ;;  %v1671_v33 = vld [vmem:[%s1398_s30 + $0x190] sm:$0xff] }
  0x82   : > { %v1053_v54 = vpop.eup %1052  ;;  %675 = vst [vmem:[%s1497_s17 + $0xd0] sm:$0xff] %v611_v37  ;;  %v613_v56 = vmul.f32 %v1051_v51, %v1533_v49  ;;  %1078 = vpow2.f32 %v851_v6  ;;  %v857_v37 = vmul.f32 -1.442695, %v1665_v25 }
  0x83   : > { %v1055_v14 = vpop.eup %1054  ;;  %676 = vst [vmem:[%s1497_s17 + $0xd8] sm:$0xff] %v612_v40  ;;  %v614_v61 = vmul.f32 %v1053_v54, %v1539_v52  ;;  %1080 = vpow2.f32 %v852_v7  ;;  %v1679_v54 = vld [vmem:[%s1398_s30 + $0x1a0] sm:$0xff] }
  0x84   : > { %v1057_v17 = vpop.eup %1056  ;;  %677 = vst [vmem:[%s1497_s17 + $0xe0] sm:$0xff] %v613_v56  ;;  %v615_v62 = vmul.f32 %v1055_v14, %v1545_v55  ;;  %1082 = vpow2.f32 %v853_v48  ;;  %v1675_v48 = vld [vmem:[%s1398_s30 + $0x198] sm:$0xff]  ;;  %v859_v14 = vmul.f32 -1.442695, %v1671_v33 }
  0x85   : > { %v1059_v4 = vpop.eup %1058  ;;  %678 = vst [vmem:[%s1497_s17 + $0xe8] sm:$0xff] %v614_v61  ;;  %v616_v49 = vmul.f32 %v1057_v17, %v1551_v59  ;;  %1084 = vpow2.f32 %v854_v53  ;;  %v858_v53 = vmul.f32 -1.442695, %v1668_v31  ;;  %v1684_v61 = vld [vmem:[%s1398_s30 + $0x1a8] sm:$0xff] }
  0x86   : > { %v1061_v18 = vpop.eup %1060  ;;  %679 = vst [vmem:[%s1497_s17 + $0xf0] sm:$0xff] %v615_v62  ;;  %v425_v5 = vadd.f32 1.0, %v1059_v4  ;;  %1086 = vpow2.f32 %v855_v43  ;;  %v860_v62 = vmul.f32 -1.442695, %v1675_v48  ;;  %v1689_v4 = vld [vmem:[%s1398_s30 + $0x1b0] sm:$0xff] }
  0x87   : > { %v1063_v20 = vpop.eup %1062  ;;  %680 = vst [vmem:[%s1497_s17 + $0xf8] sm:$0xff] %v616_v49  ;;  %v426_v52 = vadd.f32 1.0, %v1061_v18  ;;  %1088 = vpow2.f32 %v856_v46  ;;  %v861_v18 = vmul.f32 -1.442695, %v1679_v54 }
  0x88   : > { %v1065_v11 = vpop.eup %1064  ;;  %1090 = vrcp.f32 %v425_v5  ;;  %v427_v15 = vadd.f32 1.0, %v1063_v20  ;;  %v1695_v5 = vld [vmem:[%s1398_s30 + $0x1b8] sm:$0xff] }
  0x89   : > { %v1067_v22 = vpop.eup %1066  ;;  %1092 = vrcp.f32 %v426_v52  ;;  %v428_v55 = vadd.f32 1.0, %v1065_v11  ;;  %v862_v52 = vmul.f32 -1.442695, %v1684_v61  ;;  %v1701_v11 = vld [vmem:[%s1398_s30 + $0x1c0] sm:$0xff] }
  0x8a   : > { %v1069_v57 = vpop.eup %1068  ;;  %1094 = vrcp.f32 %v427_v15  ;;  %v429_v21 = vadd.f32 1.0, %v1067_v22  ;;  %v863_v22 = vmul.f32 -1.442695, %v1689_v4 }
  0x8b   : > { %v1071_v27 = vpop.eup %1070  ;;  %1096 = vrcp.f32 %v428_v55  ;;  %v430_v59 = vadd.f32 1.0, %v1069_v57  ;;  %v1707_v55 = vld [vmem:[%s1398_s30 + $0x1c8] sm:$0xff] }
  0x8c   : > { %v1073_v60 = vpop.eup %1072  ;;  %1098 = vrcp.f32 %v429_v21  ;;  %v431_v24 = vadd.f32 1.0, %v1071_v27  ;;  %v864_v21 = vmul.f32 -1.442695, %v1695_v5  ;;  %v1713_v27 = vld [vmem:[%s1398_s30 + $0x1d0] sm:$0xff] }
  0x8d   : > { %v1075_v30 = vpop.eup %1074  ;;  %1100 = vrcp.f32 %v430_v59  ;;  %v432_v63 = vadd.f32 1.0, %v1073_v60  ;;  %v865_v60 = vmul.f32 -1.442695, %v1701_v11 }
  0x8e   : > { %v1077_v32 = vpop.eup %1076  ;;  %1102 = vrcp.f32 %v431_v24  ;;  %v433_v0 = vadd.f32 1.0, %v1075_v30  ;;  %v1719_v24 = vld [vmem:[%s1398_s30 + $0x1d8] sm:$0xff] }
  0x8f   : > { %v1079_v9 = vpop.eup %1078  ;;  %1104 = vrcp.f32 %v432_v63  ;;  %v434_v1 = vadd.f32 1.0, %v1077_v32  ;;  %v866_v63 = vmul.f32 -1.442695, %v1707_v55  ;;  %v1725_v32 = vld [vmem:[%s1398_s30 + $0x1e0] sm:$0xff] }
  0x90   : > { %v1081_v28 = vpop.eup %1080  ;;  %1106 = vrcp.f32 %v433_v0  ;;  %v435_v16 = vadd.f32 1.0, %v1079_v9  ;;  %v867_v9 = vmul.f32 -1.442695, %v1713_v27 }
  0x91   : > { %v1083_v35 = vpop.eup %1082  ;;  %1108 = vrcp.f32 %v434_v1  ;;  %v436_v38 = vadd.f32 1.0, %v1081_v28  ;;  %v1731_v1 = vld [vmem:[%s1398_s30 + $0x1e8] sm:$0xff] }
  0x92   : > { %v1085_v2 = vpop.eup %1084  ;;  %1110 = vrcp.f32 %v435_v16  ;;  %v437_v41 = vadd.f32 1.0, %v1083_v35  ;;  %v868_v16 = vmul.f32 -1.442695, %v1719_v24  ;;  %v1737_v35 = vld [vmem:[%s1398_s30 + $0x1f0] sm:$0xff] }
  0x93   : > { %v1087_v6 = vpop.eup %1086  ;;  %1112 = vrcp.f32 %v436_v38  ;;  %v438_v44 = vadd.f32 1.0, %v1085_v2  ;;  %v869_v2 = vmul.f32 -1.442695, %v1725_v32 }
  0x94   : > { %v1089_v7 = vpop.eup %1088  ;;  %1114 = vrcp.f32 %v437_v41  ;;  %v439_v47 = vadd.f32 1.0, %v1087_v6  ;;  %v1743_v41 = vld [vmem:[%s1398_s30 + $0x1f8] sm:$0xff] }
  0x95   : > { %v1091_v51 = vpop.eup %1090  ;;  %1116 = vrcp.f32 %v438_v44  ;;  %v440_v40 = vadd.f32 1.0, %v1089_v7  ;;  %v870_v44 = vmul.f32 -1.442695, %v1731_v1 }
  0x96   : > { %v1093_v56 = vpop.eup %1092  ;;  %v617_v43 = vmul.f32 %v1091_v51, %v1569_v8  ;;  %1118 = vrcp.f32 %v439_v47 }
  0x97   : > { %v1095_v46 = vpop.eup %1094  ;;  %v618_v17 = vmul.f32 %v1093_v56, %v1572_v12  ;;  %1120 = vrcp.f32 %v440_v40 }
  0x98   : > { %v1097_v49 = vpop.eup %1096  ;;  %681 = vst [vmem:[%s1497_s17 + $0x100] sm:$0xff] %v617_v43  ;;  %v619_v8 = vmul.f32 %v1095_v46, %v1575_v13  ;;  %1122 = vpow2.f32 %v857_v37 }
  0x99   : > { %v1099_v20 = vpop.eup %1098  ;;  %682 = vst [vmem:[%s1497_s17 + $0x108] sm:$0xff] %v618_v17  ;;  %v620_v12 = vmul.f32 %v1097_v49, %v1579_v58  ;;  %1124 = vpow2.f32 %v858_v53 }
  0x9a   : > { %v1101_v15 = vpop.eup %1100  ;;  %683 = vst [vmem:[%s1497_s17 + $0x110] sm:$0xff] %v619_v8  ;;  %v621_v13 = vmul.f32 %v1099_v20, %v1583_v3  ;;  %1126 = vpow2.f32 %v859_v14 }
  0x9b   : > { %v1103_v57 = vpop.eup %1102  ;;  %684 = vst [vmem:[%s1497_s17 + $0x118] sm:$0xff] %v620_v12  ;;  %v622_v58 = vmul.f32 %v1101_v15, %v1588_v10  ;;  %1128 = vpow2.f32 %v860_v62 }
  0x9c   : > { %v1105_v59 = vpop.eup %1104  ;;  %685 = vst [vmem:[%s1497_s17 + $0x120] sm:$0xff] %v621_v13  ;;  %v623_v3 = vmul.f32 %v1103_v57, %v1593_v19  ;;  %1130 = vpow2.f32 %v861_v18 }
  0x9d   : > { %v1107_v30 = vpop.eup %1106  ;;  %686 = vst [vmem:[%s1497_s17 + $0x128] sm:$0xff] %v622_v58  ;;  %v624_v10 = vmul.f32 %v1105_v59, %v1599_v23  ;;  %1132 = vpow2.f32 %v862_v52 }
  0x9e   : > { %v1109_v0 = vpop.eup %1108  ;;  %687 = vst [vmem:[%s1497_s17 + $0x130] sm:$0xff] %v623_v3  ;;  %v625_v19 = vmul.f32 %v1107_v30, %v1605_v29  ;;  %1134 = vpow2.f32 %v863_v22 }
  0x9f   : > { %v1111_v28 = vpop.eup %1110  ;;  %688 = vst [vmem:[%s1497_s17 + $0x138] sm:$0xff] %v624_v10  ;;  %v626_v23 = vmul.f32 %v1109_v0, %v1611_v26  ;;  %1136 = vpow2.f32 %v864_v21 }
  0xa0   : > { %v1113_v38 = vpop.eup %1112  ;;  %689 = vst [vmem:[%s1497_s17 + $0x140] sm:$0xff] %v625_v19  ;;  %v627_v29 = vmul.f32 %v1111_v28, %v1617_v34  ;;  %1138 = vpow2.f32 %v865_v60  ;;  %v871_v34 = vmul.f32 -1.442695, %v1737_v35 }
  0xa1   : > { %v1115_v6 = vpop.eup %1114  ;;  %690 = vst [vmem:[%s1497_s17 + $0x148] sm:$0xff] %v626_v23  ;;  %v628_v26 = vmul.f32 %v1113_v38, %v1623_v36  ;;  %1140 = vpow2.f32 %v866_v63  ;;  %v872_v36 = vmul.f32 -1.442695, %v1743_v41 }
  0xa2   : > { %v1117_v7 = vpop.eup %1116  ;;  %691 = vst [vmem:[%s1497_s17 + $0x150] sm:$0xff] %v627_v29  ;;  %v629_v47 = vmul.f32 %v1115_v6, %v1629_v39  ;;  %1142 = vpow2.f32 %v867_v9 }
  0xa3   : > { %v1119_v37 = vpop.eup %1118  ;;  %692 = vst [vmem:[%s1497_s17 + $0x158] sm:$0xff] %v628_v26  ;;  %v630_v51 = vmul.f32 %v1117_v7, %v1635_v42  ;;  %1144 = vpow2.f32 %v868_v16 }
  0xa4   : > { %v1121_v40 = vpop.eup %1120  ;;  %693 = vst [vmem:[%s1497_s17 + $0x160] sm:$0xff] %v629_v47  ;;  %v631_v53 = vmul.f32 %v1119_v37, %v1641_v45  ;;  %1146 = vpow2.f32 %v869_v2 }
  0xa5   : > { %v1123_v56 = vpop.eup %1122  ;;  %694 = vst [vmem:[%s1497_s17 + $0x168] sm:$0xff] %v630_v51  ;;  %v632_v39 = vmul.f32 %v1121_v40, %v1647_v50  ;;  %1148 = vpow2.f32 %v870_v44 }
  0xa6   : > { %v1125_v43 = vpop.eup %1124  ;;  %695 = vst [vmem:[%s1497_s17 + $0x170] sm:$0xff] %v631_v53  ;;  %v441_v14 = vadd.f32 1.0, %v1123_v56  ;;  %1150 = vpow2.f32 %v871_v34 }
  0xa7   : > { %v1127_v46 = vpop.eup %1126  ;;  %696 = vst [vmem:[%s1497_s17 + $0x178] sm:$0xff] %v632_v39  ;;  %v442_v42 = vadd.f32 1.0, %v1125_v43  ;;  %1152 = vpow2.f32 %v872_v36 }
  0xa8   : > { %v1129_v17 = vpop.eup %1128  ;;  %1154 = vrcp.f32 %v441_v14  ;;  %v443_v62 = vadd.f32 1.0, %v1127_v46 }
  0xa9   : > { %v1131_v49 = vpop.eup %1130  ;;  %1156 = vrcp.f32 %v442_v42  ;;  %v444_v45 = vadd.f32 1.0, %v1129_v17 }
  0xaa   : > { %v1133_v8 = vpop.eup %1132  ;;  %1158 = vrcp.f32 %v443_v62  ;;  %v445_v18 = vadd.f32 1.0, %v1131_v49 }
  0xab   : > { %v1135_v20 = vpop.eup %1134  ;;  %1160 = vrcp.f32 %v444_v45  ;;  %v446_v50 = vadd.f32 1.0, %v1133_v8 }
  0xac   : > { %v1137_v12 = vpop.eup %1136  ;;  %1162 = vrcp.f32 %v445_v18  ;;  %v447_v52 = vadd.f32 1.0, %v1135_v20 }
  0xad   : > { %v1139_v15 = vpop.eup %1138  ;;  %1164 = vrcp.f32 %v446_v50  ;;  %v448_v13 = vadd.f32 1.0, %v1137_v12 }
  0xae   : > { %v1141_v22 = vpop.eup %1140  ;;  %1166 = vrcp.f32 %v447_v52  ;;  %v449_v57 = vadd.f32 1.0, %v1139_v15 }
  0xaf   : > { %v1143_v58 = vpop.eup %1142  ;;  %1168 = vrcp.f32 %v448_v13  ;;  %v450_v21 = vadd.f32 1.0, %v1141_v22 }
  0xb0   : > { %v1145_v59 = vpop.eup %1144  ;;  %1170 = vrcp.f32 %v449_v57  ;;  %v451_v3 = vadd.f32 1.0, %v1143_v58 }
  0xb1   : > { %v1147_v60 = vpop.eup %1146  ;;  %1172 = vrcp.f32 %v450_v21  ;;  %v452_v30 = vadd.f32 1.0, %v1145_v59 }
  0xb2   : > { %v1149_v10 = vpop.eup %1148  ;;  %1174 = vrcp.f32 %v451_v3  ;;  %v453_v63 = vadd.f32 1.0, %v1147_v60 }
  0xb3   : > { %v1151_v0 = vpop.eup %1150  ;;  %1176 = vrcp.f32 %v452_v30  ;;  %v454_v19 = vadd.f32 1.0, %v1149_v10 }
  0xb4   : > { %v1153_v9 = vpop.eup %1152  ;;  %1178 = vrcp.f32 %v453_v63  ;;  %v455_v28 = vadd.f32 1.0, %v1151_v0 }
  0xb5   : > { %v1155_v23 = vpop.eup %1154  ;;  %1180 = vrcp.f32 %v454_v19  ;;  %v456_v16 = vadd.f32 1.0, %v1153_v9 }
  0xb6   : > { %v1157_v38 = vpop.eup %1156  ;;  %v633_v29 = vmul.f32 %v1155_v23, %v1665_v25  ;;  %1182 = vrcp.f32 %v455_v28 }
  0xb7   : > { %v1159_v2 = vpop.eup %1158  ;;  %v634_v6 = vmul.f32 %v1157_v38, %v1668_v31  ;;  %1184 = vrcp.f32 %v456_v16 }
  0xb8   : > { %v1161_v26 = vpop.eup %1160  ;;  %697 = vst [vmem:[%s1497_s17 + $0x180] sm:$0xff] %v633_v29  ;;  %v635_v44 = vmul.f32 %v1159_v2, %v1671_v33 }
  0xb9   : > { %v1163_v7 = vpop.eup %1162  ;;  %698 = vst [vmem:[%s1497_s17 + $0x188] sm:$0xff] %v634_v6  ;;  %v636_v47 = vmul.f32 %v1161_v26, %v1675_v48 }
  0xba   : > { %v1165_v34 = vpop.eup %1164  ;;  %699 = vst [vmem:[%s1497_s17 + $0x190] sm:$0xff] %v635_v44  ;;  %v637_v25 = vmul.f32 %v1163_v7, %v1679_v54 }
  0xbb   : > { %v1167_v37 = vpop.eup %1166  ;;  %700 = vst [vmem:[%s1497_s17 + $0x198] sm:$0xff] %v636_v47  ;;  %v638_v31 = vmul.f32 %v1165_v34, %v1684_v61 }
  0xbc   : > { %v1169_v51 = vpop.eup %1168  ;;  %701 = vst [vmem:[%s1497_s17 + $0x1a0] sm:$0xff] %v637_v25  ;;  %v639_v33 = vmul.f32 %v1167_v37, %v1689_v4 }
  0xbd   : > { %v1171_v36 = vpop.eup %1170  ;;  %702 = vst [vmem:[%s1497_s17 + $0x1a8] sm:$0xff] %v638_v31  ;;  %v640_v48 = vmul.f32 %v1169_v51, %v1695_v5 }
  0xbe   : > { %v1173_v40 = vpop.eup %1172  ;;  %703 = vst [vmem:[%s1497_s17 + $0x1b0] sm:$0xff] %v639_v33  ;;  %v641_v54 = vmul.f32 %v1171_v36, %v1701_v11 }
  0xbf   : > { %v1175_v53 = vpop.eup %1174  ;;  %704 = vst [vmem:[%s1497_s17 + $0x1b8] sm:$0xff] %v640_v48  ;;  %v642_v61 = vmul.f32 %v1173_v40, %v1707_v55 }
  0xc0   : > { %v1177_v56 = vpop.eup %1176  ;;  %705 = vst [vmem:[%s1497_s17 + $0x1c0] sm:$0xff] %v641_v54  ;;  %v643_v4 = vmul.f32 %v1175_v53, %v1713_v27 }
  0xc1   : > { %v1179_v39 = vpop.eup %1178  ;;  %706 = vst [vmem:[%s1497_s17 + $0x1c8] sm:$0xff] %v642_v61  ;;  %v644_v5 = vmul.f32 %v1177_v56, %v1719_v24 }
  0xc2   : > { %v1181_v11 = vpop.eup %1180  ;;  %707 = vst [vmem:[%s1497_s17 + $0x1d0] sm:$0xff] %v643_v4  ;;  %v645_v43 = vmul.f32 %v1179_v39, %v1725_v32 }
  0xc3   : > { %v1183_v55 = vpop.eup %1182  ;;  %708 = vst [vmem:[%s1497_s17 + $0x1d8] sm:$0xff] %v644_v5  ;;  %v646_v14 = vmul.f32 %v1181_v11, %v1731_v1 }
  0xc4   : > { %v1185_v27 = vpop.eup %1184  ;;  %709 = vst [vmem:[%s1497_s17 + $0x1e0] sm:$0xff] %v645_v43  ;;  %v647_v46 = vmul.f32 %v1183_v55, %v1737_v35 }
  0xc5   : > { %710 = vst [vmem:[%s1497_s17 + $0x1e8] sm:$0xff] %v646_v14  ;;  %v648_v24 = vmul.f32 %v1185_v27, %v1743_v41 }
  0xc6   : > { %711 = vst [vmem:[%s1497_s17 + $0x1f0] sm:$0xff] %v647_v46 }
  0xc7   : > { %712 = vst [vmem:[%s1497_s17 + $0x1f8] sm:$0xff] %v648_v24 }
  0xc8   : > { %1227 = shalt.err (!%p1224_p9)
}
  0xc9   : > { %s1228_s13 = scalar_lea.hbm %s1793_s10, 8192  ;;  %s1232_s20 = scalar_lea.hbm %s1842_s1, 65536 }
  0xca   : > { %p1229_p13 = scmp.ne.s32.totalorder %s1793_s10, %s1228_s13  ;;  %p1233_p2 = scmp.lt.s32.totalorder %s1793_s10, %s1842_s1 }
  0xcb   : > { %p1234_p3 = scmp.lt.s32.totalorder %s1232_s20, %s1228_s13 }
  0xcc   : > { %p1230_p1 = pnand %p1229_p13, %p1851_p11 }
  0xcd   : > { %p1235_p6 = por %p1234_p3, %p1233_p2 }
  0xce   : > { %p1231_p0 = pneg %p1230_p1 }
  0xd0   : > { %p1236_p10 = pnand %p1235_p6, %p1231_p0 }
  0xd2   : > { %1239 = shalt.err (!%p1236_p10)
}
  0xd3   : > { %s1284_s24 = smov 128   ;;  %s1285_s26 = smov 8  }
  0xd4   : > { %882 = dma.vmem_to_hbm [thread:$0]  (%p1851_p11), %s1795_s27, 8192, %s1793_s10, %s714_s2, %s1284_s24, %s1284_s24, %s1285_s26  }
  0xd5 PF: > { %p893_p12 = scmp.ge.s32.totalorder %s1278_s9, 2  ;;  %s742_s30 = sand.u32 1, %s1266_s6  }
  0xd6   : > { %p1852_p4 = scmp.ne.s32.totalorder %s1848_s19, 0  ;;  %s743_s17 = scalar_lea.sflag [#allocation4], %s742_s30 }
  0xd8   : > { %p889_p5 = pnand %p893_p12, %p1852_p4 }
  0xda   : > { %p890_p7 = pneg %p889_p5 }
  0xdc   : > { %1261 = dma.done.wait (%p890_p7), %s743_s17, 8192  }
  0xdd   : > { %1263 = vsyncadd (%p890_p7), %s743_s17, 4294959104  ;;  %p14_p8 = scmp.ge.s32.totalorder %s1321_s12, 10   ;;  %s1853_s6 = smov %s1270_s7 }
  0xde   : > { %s1854_s7 = smov %s1274_s8  ;;  %s1855_s8 = smov %s1333_s15 }
  0xdf   : > { %s1856_s9 = smov %s1321_s12  ;;  %16 = sbr.rel (!%p14_p8) target bundleno = 5 (0x5), region = 69 }
  0xe4   :  { %748 = vsyncpa [#allocation3], 1 }
  0xe5   :  { %750 = vsyncpa [#allocation3 + $0x1], 1 }
  0xe6   :  { %751 = vsyncpa [#allocation4], 1 }
  0xe7   :  { %753 = vsyncpa [#allocation4 + $0x1], 1 }

</bundles_post_ra>
